<compile_context>
chip_gen: v7x
topology: tpu7x:2x2x1
jax: 0.10.0
libtpu: 0.0.40
codegen_flags: <defaults>
</compile_context>

<pallas_src>
import math

import jax
import jax.numpy as jnp
from jax.experimental import pallas as pl
from jax.experimental.pallas import tpu as pltpu


def _round_up(x: int, m: int) -> int:
    return ((x + m - 1) // m) * m


def _round_down8(x: int) -> int:
    return max(8, (x // 8) * 8)


def _device_block_budget():
    """(per-input VMEM bytes per grid step, explicit vmem limit or None)."""
    try:
        kind = jax.devices()[0].device_kind.lower()
    except Exception:  # pragma: no cover - defensive
        kind = ""
    if "v7" in kind:
        # 64 MiB physical VMEM, ~3.2 TB/s: big steps amortize ~0.35us/step
        # overhead; 2 inputs x 2 bufs x 8 MiB = 32 MiB needs an explicit limit.
        return 8 << 20, 40 << 20
    if "v6" in kind:
        # 16 MiB double-buffered fits the 32 MiB scoped default.
        return 4 << 20, None
    # v5e (16 MiB scoped default), older chips, or unknown: stay conservative.
    return 2 << 20, None


def _pick_view(shape):
    """Pick a copy-free 2-D view (rows, width) of the flattened tensor.

    A reshape of a contiguous row-major array is a bitcast (no HBM traffic):
      * prefer a fully lane-dense width (multiple of 128) dividing the total;
      * otherwise collapse trailing dims until width >= 128 and use it as the
        block's FULL last dim (always a legal BlockSpec, even if % 128 != 0).
    Never pads, never copies the inputs.
    """
    total = int(math.prod(shape)) if shape else 1
    for bc in (2048, 1024, 512, 256, 128):
        if total % bc == 0:
            return total // bc, bc
    dims = shape[1:] if len(shape) > 1 else shape
    width = 1
    for d in reversed(dims):
        width *= int(d)
        if width >= 128:
            break
    return total // width, width


def _make_partial_kernel(n_rows: int, block_rows: int, needs_mask: bool):
    """Per (BR, W) block: per-lane partial sum of (noisy - x_start)^2 in f32.

    Only the sublane (row) axis is reduced inside the kernel (pure VPU); the
    tiny cross-lane / cross-block reduction happens once in the wrapper.
    When the last row-block is partial, out-of-bounds rows (unspecified DMA
    contents) are zeroed with a row mask before the reduce.
    """
    def kernel(x_ref, y_ref, out_ref):
        d = y_ref[...].astype(jnp.float32) - x_ref[...].astype(jnp.float32)
        sq = d * d
        if needs_mask:
            row0 = pl.program_id(0) * block_rows
            rid = jax.lax.broadcasted_iota(jnp.int32, (block_rows, 1), 0) + row0
            sq = jnp.where(rid < n_rows, sq, 0.0)
        out_ref[...] = jnp.sum(sq, axis=0)[None, None, :]
    return kernel


def training_loss_mse(*, x_start, noise, noisy_samples, predicted_noise,
                      timesteps, predicted_log_variance=None,
                      min_pallas_elems=2_000_000, block_rows=None):
    """JAX wrapper mirroring TrainingLoss(loss_type='mse').forward(...)."""
    assert predicted_log_variance is None, (
        "variance-learning path (VariationalLowerBound) not implemented")
    # The PyTorch 'mse' path compares noisy_samples vs x_start (NOT
    # predicted_noise vs noise); noise/predicted_noise/timesteps are unused.
    del noise, predicted_noise, timesteps

    assert x_start.shape == noisy_samples.shape
    shape = x_start.shape
    total = int(math.prod(shape)) if shape else 1
    per_sample = int(math.prod(shape[1:])) if len(shape) > 1 else 1
    inv_denom = jnp.float32(1.0 / per_sample)

    def _xla_path():
        d = noisy_samples.astype(jnp.float32) - x_start.astype(jnp.float32)
        return jnp.sum(d * d) * inv_denom

    # Small-input fast path: a fused XLA subtract-square-reduce beats a
    # separate pallas_call launch.
    if total < max(int(min_pallas_elems), 8 * 128):
        return _xla_path()

    M, W = _pick_view(shape)
    itemsize = jnp.dtype(x_start.dtype).itemsize

    # Degenerate extremely-wide trailing dim: a minimum 8-row double-buffered
    # tile would not fit VMEM.  TODO(synk): would need 2-D column tiling.
    if W * itemsize * 8 * 4 > (32 << 20):
        return _xla_path()

    blk_bytes, _ = _device_block_budget()

    if block_rows is not None:
        assert block_rows % 8 == 0 and block_rows <= _round_up(M, 8)
        BR = int(block_rows)
    elif M <= 8:
        BR = M                                   # full-dim block, always legal
    else:
        # Constant bytes-per-step across dtypes/generations.
        rows_target = _round_down8(blk_bytes // (W * itemsize))
        rows_cap = min(rows_target, _round_down8(M))
        # Megacore balance (v7x: 2 TCs): prefer ~8 blocks for medium problems,
        # but never shrink a block below ~2 MiB/input.
        rows_floor = min(rows_cap, _round_down8((2 << 20) // (W * itemsize)))
        rows_8blk = _round_up(-(-M // 8), 8)
        BR = min(rows_cap, max(rows_floor, rows_8blk))

    G = -(-M // BR)
    needs_mask = (M % BR) != 0

    # Copy-free views (contiguous reshape == bitcast).
    x2 = x_start.reshape(M, W)
    y2 = noisy_samples.reshape(M, W)

    # Double-buffered footprint: 2 inputs x 2 bufs x tile (+ tiny output).
    vmem_needed = 4 * BR * W * itemsize + 4 * W * 4
    vmem_limit = int(vmem_needed + (8 << 20)) if vmem_needed > (24 << 20) else None

    cost = pl.CostEstimate(
        flops=3 * total,                          # sub + mul + add per element
        transcendentals=0,
        bytes_accessed=2 * total * itemsize + G * W * 4,
    )

    partials = pl.pallas_call(
        _make_partial_kernel(M, BR, needs_mask),
        out_shape=jax.ShapeDtypeStruct((G, 1, W), jnp.float32),
        grid=(G,),
        in_specs=[
            pl.BlockSpec((BR, W), lambda i: (i, 0)),
            pl.BlockSpec((BR, W), lambda i: (i, 0)),
        ],
        out_specs=pl.BlockSpec((1, 1, W), lambda i: (i, 0, 0)),
        compiler_params=pltpu.CompilerParams(
            dimension_semantics=("parallel",),    # independent blocks -> 2 TCs on v7x
            vmem_limit_bytes=vmem_limit),
        cost_estimate=cost,
    )(x2, y2)

    # Tiny final reduction + single normalization by the logical per-sample size.
    return jnp.sum(partials) * inv_denom


def _ref_loss(x_start, noisy_samples):
    """Pure-JAX reference of the exact PyTorch semantics:
       mean_flat((noisy_samples - x_start)**2).sum()"""
    d = noisy_samples.astype(jnp.float32) - x_start.astype(jnp.float32)
    axes = tuple(range(1, x_start.ndim))
    return jnp.sum(jnp.mean(d * d, axis=axes))


if __name__ == "__main__":
    key = jax.random.PRNGKey(0)

    def make_inputs(key, shape, dtype):
        k1, k2, k3, k4 = jax.random.split(key, 4)
        x_start = jax.random.normal(k1, shape).astype(dtype)
        noise = jax.random.normal(k2, shape).astype(dtype)
        noisy = jax.random.normal(k3, shape).astype(dtype)
        pred_noise = jax.random.normal(k4, shape).astype(dtype)
        timesteps = jnp.arange(shape[0], dtype=jnp.int32)
        return x_start, noise, noisy, pred_noise, timesteps

    k1, k2, k3, k4, k5 = jax.random.split(key, 5)

    # Case 1: tiny (2, 8, 32) -- default threshold -> fused XLA fast path.
    xs, nz, ny, pn, ts = make_inputs(k1, (2, 8, 32), jnp.float32)
    loss1 = jax.block_until_ready(training_loss_mse(
        x_start=xs, noise=nz, noisy_samples=ny, predicted_noise=pn,
        timesteps=ts, predicted_log_variance=None))
    ref1 = _ref_loss(xs, ny)
    assert jnp.allclose(loss1, ref1, rtol=1e-5, atol=1e-5), (loss1, ref1)

    # Case 2: (2, 96, 80) f32 forced through Pallas -- lane-dense view
    # (total % 1024 == 0 -> (15, 1024)), G=2 with a masked partial last block.
    xs, nz, ny, pn, ts = make_inputs(k2, (2, 96, 80), jnp.float32)
    loss2 = jax.block_until_ready(training_loss_mse(
        x_start=xs, noise=nz, noisy_samples=ny, predicted_noise=pn,
        timesteps=ts, predicted_log_variance=None, min_pallas_elems=0))
    ref2 = _ref_loss(xs, ny)
    assert jnp.allclose(loss2, ref2, rtol=1e-4, atol=1e-5), (loss2, ref2)

    # Case 3: bf16 latents (2, 64, 128) through Pallas (f32 in-kernel accum),
    # dense (8, 2048) view, single full block.
    xs, nz, ny, pn, ts = make_inputs(k3, (2, 64, 128), jnp.bfloat16)
    loss3 = jax.block_until_ready(training_loss_mse(
        x_start=xs, noise=nz, noisy_samples=ny, predicted_noise=pn,
        timesteps=ts, predicted_log_variance=None, min_pallas_elems=0))
    ref3 = _ref_loss(xs, ny)
    assert jnp.allclose(loss3, ref3, rtol=1e-4, atol=1e-4), (loss3, ref3)

    # Case 4: ragged total (3, 49, 160) -- not a multiple of 128, so the
    # natural trailing-dim view (147, 160) is used (full-width last block dim,
    # no padding, no copies), with in-kernel row masking on the partial block.
    xs, nz, ny, pn, ts = make_inputs(k4, (3, 49, 160), jnp.float32)
    loss4 = jax.block_until_ready(training_loss_mse(
        x_start=xs, noise=nz, noisy_samples=ny, predicted_noise=pn,
        timesteps=ts, predicted_log_variance=None, min_pallas_elems=0))
    ref4 = _ref_loss(xs, ny)
    assert jnp.allclose(loss4, ref4, rtol=1e-4, atol=1e-5), (loss4, ref4)

    # Case 5: (4, 256, 128) f32 with forced block_rows=8 -> G=8 full blocks
    # (exercises the multi-block "parallel" grid with no masking).
    xs, nz, ny, pn, ts = make_inputs(k5, (4, 256, 128), jnp.float32)
    loss5 = jax.block_until_ready(training_loss_mse(
        x_start=xs, noise=nz, noisy_samples=ny, predicted_noise=pn,
        timesteps=ts, predicted_log_variance=None, min_pallas_elems=0,
        block_rows=8))
    ref5 = _ref_loss(xs, ny)
    assert jnp.allclose(loss5, ref5, rtol=1e-4, atol=1e-5), (loss5, ref5)

    print("KERNEL_OK")
</pallas_src>

<mosaic_0001>
module attributes {stable_mosaic.version = 11 : i64} {
  func.func @kernel(%arg0: i32, %arg1: memref<8x1024xf32, #tpu.memory_space<vmem>>, %arg2: memref<8x1024xf32, #tpu.memory_space<vmem>>, %arg3: memref<1x1x1024xf32, #tpu.memory_space<vmem>>) attributes {dimension_semantics = [#tpu.dimension_semantics<parallel>], iteration_bounds = array<i64: 2>, scalar_prefetch = 0 : i64, scratch_operands = 0 : i64, tpu.core_type = #tpu.core_type<tc>, window_params = [{transform_indices = @transform_0, window_bounds = array<i64: 8, 1024>}, {transform_indices = @transform_1, window_bounds = array<i64: 8, 1024>}, {transform_indices = @transform_2, window_bounds = array<i64: 1, 1, 1024>}]} {
    %c0 = arith.constant 0 : index
    %c0_0 = arith.constant 0 : index
    %0 = vector.load %arg2[%c0, %c0_0] : memref<8x1024xf32, #tpu.memory_space<vmem>>, vector<8x1024xf32>
    %c0_1 = arith.constant 0 : index
    %c0_2 = arith.constant 0 : index
    %1 = vector.load %arg1[%c0_1, %c0_2] : memref<8x1024xf32, #tpu.memory_space<vmem>>, vector<8x1024xf32>
    %2 = arith.subf %0, %1 : vector<8x1024xf32>
    %3 = arith.mulf %2, %2 : vector<8x1024xf32>
    %c8_i32 = arith.constant 8 : i32
    %4 = arith.muli %arg0, %c8_i32 : i32
    %5 = tpu.iota {dimensions = array<i32: 0>} : vector<8x1xi32>
    %6 = vector.broadcast %4 : i32 to vector<8x1xi32>
    %7 = arith.addi %5, %6 : vector<8x1xi32>
    %c15_i32 = arith.constant 15 : i32
    %8 = vector.broadcast %c15_i32 : i32 to vector<8x1xi32>
    %9 = arith.cmpi slt, %7, %8 : vector<8x1xi32>
    %cst = arith.constant 0.000000e+00 : f32
    %10 = vector.shape_cast %9 : vector<8x1xi1> to vector<8x1xi1>
    %11 = vector.broadcast %10 : vector<8x1xi1> to vector<8x1024xi1>
    %12 = vector.broadcast %cst : f32 to vector<8x1024xf32>
    %13 = arith.select %11, %3, %12 : vector<8x1024xi1>, vector<8x1024xf32>
    %cst_3 = arith.constant dense<0.000000e+00> : vector<1024xf32>
    %14 = vector.multi_reduction <add>, %13, %cst_3 [0] : vector<8x1024xf32> to vector<1024xf32>
    %15 = vector.shape_cast %14 : vector<1024xf32> to vector<1x1x1024xf32>
    %c0_4 = arith.constant 0 : index
    %c0_5 = arith.constant 0 : index
    %c0_6 = arith.constant 0 : index
    %16 = vector.load %arg3[%c0_4, %c0_5, %c0_6] : memref<1x1x1024xf32, #tpu.memory_space<vmem>>, vector<1x1x1024xf32>
    tpu.vector_store %arg3[%c0_4, %c0_5, %c0_6], %15 {strides = array<i32>} : memref<1x1x1024xf32, #tpu.memory_space<vmem>>, vector<1x1x1024xf32>,
    return
  }
  func.func @transform_0(%arg0: i32) -> (i32, i32) {
    %c0_i32 = arith.constant 0 : i32
    %c0_i32_0 = arith.constant 0 : i32
    return %arg0, %c0_i32 : i32, i32
  }
  func.func @transform_1(%arg0: i32) -> (i32, i32) {
    %c0_i32 = arith.constant 0 : i32
    %c0_i32_0 = arith.constant 0 : i32
    return %arg0, %c0_i32 : i32, i32
  }
  func.func @transform_2(%arg0: i32) -> (i32, i32, i32) {
    %c0_i32 = arith.constant 0 : i32
    %c0_i32_0 = arith.constant 0 : i32
    %c0_i32_1 = arith.constant 0 : i32
    return %arg0, %c0_i32, %c0_i32_0 : i32, i32, i32
  }
}

</mosaic_0001>

<bundles_post_ra>
// kernel: tpu_custom_call.1
= control target key start
LH: loop header
LB: loop body
LE: loop exit
PB: predicated region body
PF: predicated region fallthrough
CT: control target
= control target key end

     0   :  { %7 = vsyncpa [#allocation3], 0  ;;  %s923_s0 = inlined_call_operand.hbm [shape: f32[15,1024], index: 0, kind: input, shape index: {}]   ;;  %s924_s1 = inlined_call_operand.hbm [shape: f32[15,1024], index: 1, kind: input, shape index: {}]   ;;  %s925_s2 = inlined_call_operand.hbm [shape: f32[2,1,1024], index: 2, kind: output, shape index: {}]  }
   0x1   :  { %9 = vsyncpa [#allocation3 + $0x1], 0 }
   0x2   :  { %10 = vsyncpa [#allocation6], 0 }
   0x3   :  { %12 = vsyncpa [#allocation6 + $0x1], 0 }
   0x4   :  { %13 = vsyncpa [#allocation4], 0 }
   0x5   :  { %15 = vsyncpa [#allocation4 + $0x1], 0  ;;  %s686_s9 = smov 0   ;;  %s688_s10 = smov 0  }
   0x6   :  { %s690_s11 = smov 0   ;;  %s692_s12 = smov 0  }
   0x7 LB: > { %s707_s13 = sadd.s32 4294967295, %s665_s12   ;;  %s461_s14 = sadd.s32 4294967294, %s665_s12   ;;  %s665_s12 = sphi %s692_s12, %s944_s12   ;;  %s661_s11 = sphi %s690_s11, %s943_s11   ;;  %s657_s10 = sphi %s688_s10, %s942_s10   ;;  %s653_s9 = sphi %s686_s9, %s941_s9  }
   0x8   : > { %s711_s15 = sadd.s32 1, %s665_s12   ;;  %s28_s16 = sadd.s32 1, %s661_s11 }
   0x9   : > { %s25_s17 = ssub.s32 %s665_s12, %s711_s15  ;;  %p35_p0 = scmp.ne.s32.totalorder %s661_s11, %s657_s10 }
   0xa   : > { %p26_p1 = scmp.eq.s32.totalorder %s25_s17, 0  ;;  %p36_p2 = scmp.eq.s32.totalorder %s665_s12, 0 }
   0xb   : > { %p41_p3 = scmp.ne.s32.totalorder %s657_s10, %s653_s9  ;;  %p42_p4 = scmp.eq.s32.totalorder %s707_s13, 0 }
   0xc   : > { %s723_s18 = scalar_select %p26_p1, %s661_s11, %s28_s16  }
   0xd   : > { %p725_p5 = por %p36_p2, %p35_p0  ;;  %p729_p6 = por %p42_p4, %p41_p3 }
   0xe   : > { %p91_p7 = scmp.eq.s32.totalorder %s707_s13, 1  ;;  %p97_p8 = scmp.eq.s32.totalorder %s461_s14, 1 }
   0xf   : > { %s929_s20 = scalar_select %p729_p6, 1, 0 }
  0x10   : > { %p500_p10 = scmp.lt.s32.totalorder %s665_s12, 2  ;;  %p736_p11 = por %p91_p7, %p35_p0 }
  0x11   : > { %p740_p12 = por %p97_p8, %p41_p3  ;;  %s745_s23 = sand.u32 1, %s661_s11  }
  0x12   : > { %s930_s21 = scalar_select %p736_p11, 1, 0 }
  0x13   : > { %s931_s22 = scalar_select %p740_p12, 1, 0 }
  0x14   : > { %s480_s24 = sshll.u32 %s665_s12, 10  ;;  %s464_s25 = sshll.u32 %s745_s23, 6 }
  0x15   : > { %s754_s28 = scalar_lea.hbm %s923_s0, %s480_s24  ;;  %s121_s29 = scalar_lea.vmem [#allocation2], %s464_s25 }
  0x16   : > { %s129_s30 = sshll.u32 %s121_s29, 4  ;;  %p760_p13 = pnand %p500_p10, %p725_p5  ;;  %s764_s30 = int_to_ptr.vmem [resolvable:$true] %s129_s30 }
  0x17   : > { %s118_s4 = scalar_lea.sflag [#allocation3], %s745_s23  ;;  %s535_s5 = scalar_lea.hbm %s754_s28, 1024 }
  0x18   : > { %p536_p2 = scmp.ne.s32.totalorder %s754_s28, %s535_s5  ;;  %p537_p3 = pneg %p760_p13 }
  0x19   : > { %s540_s8 = scalar_lea.hbm %s923_s0, 2048  ;;  %p541_p5 = scmp.lt.u32.totalorder %s754_s28, %s923_s0 }
  0x1a   : > { %p538_p4 = pnand %p537_p3, %p536_p2  ;;  %p542_p8 = scmp.lt.u32.totalorder %s540_s8, %s535_s5 }
  0x1b   : > { %p544_p9 = scmp.lt.u32.totalorder %s535_s5, %s754_s28 }
  0x1c   : > { %p539_p7 = pneg %p538_p4  ;;  %p543_p10 = por %p542_p8, %p541_p5 }
  0x1e   : > { %p545_p0 = por %p544_p9, %p543_p10 }
  0x20   : > { %p546_p1 = pnand %p545_p0, %p539_p7 }
  0x22   : > { %549 = shalt.err (!%p546_p1)
}
  0x23   : > { %s550_s17 = scalar_lea.vmem %s764_s30, 1024  ;;  %s667_s19 = smov [#allocation2]  }
  0x24   : > { %p551_p2 = scmp.ne.s32.totalorder %s764_s30, %s550_s17  ;;  %s555_s26 = sshll.u32 %s667_s19, 4  ;;  %s556_s26 = int_to_ptr.vmem [resolvable:$false] %s555_s26 }
  0x25   : > { %s557_s27 = scalar_lea.vmem %s556_s26, 2048  ;;  %p558_p11 = scmp.lt.s32.totalorder %s764_s30, %s556_s26 }
  0x26   : > { %p553_p4 = pnand %p551_p2, %p537_p3  ;;  %p559_p5 = scmp.lt.s32.totalorder %s557_s27, %s550_s17 }
  0x28   : > { %p554_p12 = pneg %p553_p4  ;;  %p560_p8 = por %p559_p5, %p558_p11 }
  0x2a   : > { %p561_p9 = pnand %p560_p8, %p554_p12 }
  0x2c   : > { %564 = shalt.err (!%p561_p9)
}
  0x2d   : > { %492 = dma.hbm_to_vmem [thread:$0]  (!%p760_p13), %s754_s28, 1024, %s764_s30, %s118_s4  }
  0x2e   : > { %p933_p0 = scmp.lt.s32.totalorder %s665_s12, 3  ;;  %p934_p1 = scmp.ge.s32.totalorder %s665_s12, 1 }
  0x2f   : > { %s807_s7 = scalar_lea.hbm %s924_s1, %s480_s24  ;;  %s140_s8 = scalar_lea.vmem [#allocation5], %s464_s25 }
  0x30   : > { %p798_p7 = pnand %p934_p1, %p933_p0  ;;  %s148_s14 = sshll.u32 %s140_s8, 4  ;;  %s149_s14 = int_to_ptr.vmem [resolvable:$true] %s148_s14 }
  0x31   : > { %s137_s28 = scalar_lea.sflag [#allocation6], %s745_s23  ;;  %s565_s30 = scalar_lea.hbm %s807_s7, 1024 }
  0x32   : > { %s935_s29 = scalar_select %p798_p7, 1, 0 }
  0x33   : > { %p566_p11 = scmp.ne.s32.totalorder %s807_s7, %s565_s30  ;;  %s570_s24 = scalar_lea.hbm %s924_s1, 2048 }
  0x34   : > { %p571_p2 = scmp.lt.u32.totalorder %s807_s7, %s924_s1  ;;  %p572_p4 = scmp.lt.u32.totalorder %s570_s24, %s565_s30 }
  0x35   : > { %p568_p12 = pnand %p566_p11, %p537_p3  ;;  %p574_p8 = scmp.lt.u32.totalorder %s565_s30, %s807_s7 }
  0x36   : > { %p573_p5 = por %p572_p4, %p571_p2 }
  0x37   : > { %p569_p10 = pneg %p568_p12 }
  0x38   : > { %p575_p9 = por %p574_p8, %p573_p5 }
  0x3a   : > { %p576_p0 = pnand %p575_p9, %p569_p10 }
  0x3c   : > { %579 = shalt.err (!%p576_p0)
}
  0x3d   : > { %s580_s23 = scalar_lea.vmem %s149_s14, 1024  ;;  %s668_s25 = smov [#allocation5]  }
  0x3e   : > { %p581_p1 = scmp.ne.s32.totalorder %s149_s14, %s580_s23  ;;  %s585_s26 = sshll.u32 %s668_s25, 4  ;;  %s586_s26 = int_to_ptr.vmem [resolvable:$false] %s585_s26 }
  0x3f   : > { %s587_s27 = scalar_lea.vmem %s586_s26, 2048  ;;  %p588_p6 = scmp.lt.s32.totalorder %s149_s14, %s586_s26 }
  0x40   : > { %p583_p11 = pnand %p581_p1, %p537_p3  ;;  %p589_p7 = scmp.lt.s32.totalorder %s587_s27, %s580_s23 }
  0x42   : > { %p584_p12 = pneg %p583_p11  ;;  %p590_p2 = por %p589_p7, %p588_p6 }
  0x44   : > { %p591_p4 = pnand %p590_p2, %p584_p12 }
  0x46   : > { %594 = shalt.err (!%p591_p4)
}
  0x47   : > { %495 = dma.hbm_to_vmem [thread:$0]  (!%p760_p13), %s807_s7, 1024, %s149_s14, %s137_s28  }
  0x48   : > { %p936_p10 = scmp.ne.s32.totalorder %s935_s29, 0 }
  0x49   : > { %s834_s5 = sand.u32 (!%p936_p10), 1, %s657_s10   ;;  %p937_p6 = scmp.ne.s32.totalorder (!%p936_p10), %s929_s20, 0 }
  0x4a   : > { %157 = sbr.rel (%p936_p10) target bundleno = 132 (0x84), region = 28  ;;  %s471_s6 = sshll.u32 (!%p936_p10), %s834_s5, 6 }
  0x4b   : > { %s160_s8 = scalar_lea.sflag (!%p936_p10), [#allocation3], %s834_s5  ;;  %s838_s30 = scalar_lea.vmem (!%p936_p10), [#allocation2], %s471_s6 }
  0x51   : > { %640 = dma.done.wait (%p937_p6), %s160_s8, 1024  }
  0x52   : > { %642 = vsyncadd (%p937_p6), %s160_s8, 4294966272  ;;  %s169_s3 = scalar_lea.sflag [#allocation6], %s834_s5  ;;  %s172_s29 = scalar_lea.vmem [#allocation5], %s471_s6 }
  0x53   : > { %644 = dma.done.wait (%p937_p6), %s169_s3, 1024  }
  0x54   : > { %646 = vsyncadd (%p937_p6), %s169_s3, 4294966272  ;;  %v231_v0 = vlaneseq  ;;  %s474_s7 = sshll.u32 %s707_s13, 3  ;;  %v669_v1 = vmov 1966171168   ;;  %v198_v6 = vld [vmem:[%s172_s29] sm:$0xff]  ;;  %v199_v7 = vld [vmem:[%s172_s29 + $0x8] sm:$0xff] }
  0x55   : > { %v307_v2 = vunpack.c.l.s4 %v669_v1  ;;  %v233_v4 = vstv %s474_s7  ;;  %v200_v8 = vld [vmem:[%s172_s29 + $0x10] sm:$0xff]  ;;  %v201_v10 = vld [vmem:[%s172_s29 + $0x18] sm:$0xff]  ;;  %v202_v11 = vld [vmem:[%s172_s29 + $0x20] sm:$0xff]  ;;  %s473_s20 = sshll.u32 %s834_s5, 3  ;;  %s482_s4 = sshll.u32 %s707_s13, 7 }
  0x56   : > { %v232_v3 = vshrl.u32 %v231_v0, 7  ;;  %v203_v12 = vld [vmem:[%s172_s29 + $0x28] sm:$0xff]  ;;  %v204_v13 = vld [vmem:[%s172_s29 + $0x30] sm:$0xff]  ;;  %v205_v14 = vld [vmem:[%s172_s29 + $0x38] sm:$0xff]  ;;  %s197_s14 = scalar_lea.vmem [#allocation7], %s473_s20  ;;  %s881_s17 = scalar_lea.hbm %s925_s2, %s482_s4 }
  0x57   : > { %v308_v5 = vunpack.c.0.s8 %v307_v2  ;;  %v206_v15 = vld [vmem:[%s838_s30] sm:$0xff]  ;;  %v207_v16 = vld [vmem:[%s838_s30 + $0x8] sm:$0xff]  ;;  %v208_v17 = vld [vmem:[%s838_s30 + $0x10] sm:$0xff]  ;;  %s368_s28 = sshll.u32 %s197_s14, 4  ;;  %s354_s19 = scalar_lea.sflag [#allocation4], %s834_s5  ;;  %s876_s28 = int_to_ptr.vmem [resolvable:$true] %s368_s28 }
  0x58   : > { %v234_v9 = vadd.s32 %v233_v4, %v232_v3  ;;  %v209_v18 = vld [vmem:[%s838_s30 + $0x18] sm:$0xff]  ;;  %v214_v19 = vsub.f32 %v198_v6, %v206_v15  ;;  %v210_v21 = vld [vmem:[%s838_s30 + $0x20] sm:$0xff]  ;;  %v211_v22 = vld [vmem:[%s838_s30 + $0x28] sm:$0xff]  ;;  %v215_v24 = vsub.f32 %v199_v7, %v207_v16  ;;  %v216_v25 = vsub.f32 %v200_v8, %v208_v17  ;;  %s595_s23 = scalar_lea.vmem %s876_s28, 128  ;;  %p938_p3 = scmp.ne.s32.totalorder %s930_s21, 0 }
  0x59   : > { %v854_v20 = vsub.s32 %v308_v5, %v232_v3  ;;  %v212_v23 = vld [vmem:[%s838_s30 + $0x30] sm:$0xff]  ;;  %v217_v26 = vsub.f32 %v201_v10, %v209_v18  ;;  %v213_v27 = vld [vmem:[%s838_s30 + $0x38] sm:$0xff]  ;;  %v218_v28 = vsub.f32 %v202_v11, %v210_v21  ;;  %v219_v29 = vsub.f32 %v203_v12, %v211_v22  ;;  %p596_p13 = scmp.ne.s32.totalorder %s876_s28, %s595_s23  ;;  %s670_s13 = smov [#allocation7]  }
  0x5a   : > { %vm235_vm0 = vcmp.lt.s32.totalorder %v234_v9, 15  ;;  %v220_v30 = vsub.f32 %v204_v13, %v212_v23  ;;  %v222_v31 = vmul.f32 %v214_v19, %v214_v19  ;;  %v221_v32 = vsub.f32 %v205_v14, %v213_v27  ;;  %s599_s25 = sshll.u32 %s670_s13, 4  ;;  %s600_s25 = int_to_ptr.vmem [resolvable:$false] %s599_s25 }
  0x5b   : > { %v223_v33 = vmul.f32 %v215_v24, %v215_v24  ;;  %v224_v34 = vmul.f32 %v216_v25, %v216_v25  ;;  %v225_v35 = vmul.f32 %v217_v26, %v217_v26  ;;  %v226_v36 = vmul.f32 %v218_v28, %v218_v28  ;;  %p597_p7 = pnand %p596_p13, %p938_p3  ;;  %s601_s26 = scalar_lea.vmem %s600_s25, 256 }
  0x5c   : > { %v227_v37 = vmul.f32 %v219_v29, %v219_v29  ;;  %v228_v38 = vmul.f32 %v220_v30, %v220_v30  ;;  %v238_v39 = vsel %vm235_vm0, %v222_v31, 0.0  ;;  %v229_v40 = vmul.f32 %v221_v32, %v221_v32  ;;  %p602_p8 = scmp.lt.s32.totalorder %s876_s28, %s600_s25  ;;  %p603_p9 = scmp.lt.s32.totalorder %s601_s26, %s595_s23 }
  0x5d   : > { %v239_v41 = vsel %vm235_vm0, %v223_v33, 0.0  ;;  %v240_v42 = vsel %vm235_vm0, %v224_v34, 0.0  ;;  %v241_v43 = vsel %vm235_vm0, %v225_v35, 0.0  ;;  %v242_v44 = vsel %vm235_vm0, %v226_v36, 0.0  ;;  %p598_p5 = pneg %p597_p7 }
  0x5e   : > { %v243_v45 = vsel %vm235_vm0, %v227_v37, 0.0  ;;  %v244_v46 = vsel %vm235_vm0, %v228_v38, 0.0  ;;  %v246_v47 = vrot.slane %v238_v39, 4  ;;  %v245_v48 = vsel %vm235_vm0, %v229_v40, 0.0  ;;  %p604_p0 = por %p603_p9, %p602_p8 }
  0x5f   : > { %v252_v49 = vrot.slane %v239_v41, 4  ;;  %v258_v50 = vrot.slane %v240_v42, 4  ;;  %v264_v51 = vrot.slane %v241_v43, 4  ;;  %v270_v53 = vrot.slane %v242_v44, 4 }
  0x60   : > { %v247_v52 = vadd.f32 %v246_v47, %v238_v39  ;;  %v276_v54 = vrot.slane %v243_v45, 4  ;;  %v282_v55 = vrot.slane %v244_v46, 4  ;;  %v288_v59 = vrot.slane %v245_v48, 4  ;;  %p605_p1 = pnand %p604_p0, %p598_p5 }
  0x61   : > { %v253_v56 = vadd.f32 %v252_v49, %v239_v41  ;;  %v259_v57 = vadd.f32 %v258_v50, %v240_v42  ;;  %v265_v58 = vadd.f32 %v264_v51, %v241_v43  ;;  %v271_v61 = vadd.f32 %v270_v53, %v242_v44 }
  0x62   : > { %v248_v60 = vrot.slane %v247_v52, 2  ;;  %v277_v62 = vadd.f32 %v276_v54, %v243_v45  ;;  %v283_v63 = vadd.f32 %v282_v55, %v244_v46  ;;  %v289_v3 = vadd.f32 %v288_v59, %v245_v48 }
  0x63   : > { %v254_v0 = vrot.slane %v253_v56, 2  ;;  %v260_v1 = vrot.slane %v259_v57, 2  ;;  %v266_v2 = vrot.slane %v265_v58, 2  ;;  %v272_v5 = vrot.slane %v271_v61, 2 }
  0x64   : > { %v249_v4 = vadd.f32 %v248_v60, %v247_v52  ;;  %v278_v6 = vrot.slane %v277_v62, 2  ;;  %v284_v7 = vrot.slane %v283_v63, 2  ;;  %v290_v11 = vrot.slane %v289_v3, 2 }
  0x65   : > { %v255_v8 = vadd.f32 %v254_v0, %v253_v56  ;;  %v261_v9 = vadd.f32 %v260_v1, %v259_v57  ;;  %v267_v10 = vadd.f32 %v266_v2, %v265_v58  ;;  %v273_v13 = vadd.f32 %v272_v5, %v271_v61 }
  0x66   : > { %v250_v12 = vrot.slane %v249_v4, 1  ;;  %v279_v14 = vadd.f32 %v278_v6, %v277_v62  ;;  %v285_v15 = vadd.f32 %v284_v7, %v283_v63  ;;  %v291_v19 = vadd.f32 %v290_v11, %v289_v3 }
  0x67   : > { %v256_v16 = vrot.slane %v255_v8, 1  ;;  %v262_v17 = vrot.slane %v261_v9, 1  ;;  %v268_v18 = vrot.slane %v267_v10, 1  ;;  %v274_v22 = vrot.slane %v273_v13, 1 }
  0x68   : > { %v251_v21 = vadd.f32 %v250_v12, %v249_v4  ;;  %v280_v23 = vrot.slane %v279_v14, 1  ;;  %v286_v24 = vrot.slane %v285_v15, 1  ;;  %v292_v28 = vrot.slane %v291_v19, 1 }
  0x69   : > { %v257_v25 = vadd.f32 %v256_v16, %v255_v8  ;;  %v263_v26 = vadd.f32 %v262_v17, %v261_v9  ;;  %v269_v27 = vadd.f32 %v268_v18, %v267_v10  ;;  %v275_v29 = vadd.f32 %v274_v22, %v273_v13 }
  0x6a   : > { %v281_v30 = vadd.f32 %v280_v23, %v279_v14  ;;  %v287_v31 = vadd.f32 %v286_v24, %v285_v15  ;;  %v293_v32 = vadd.f32 %v292_v28, %v291_v19 }
  0x6b   : > { %v302_v33 = vcombine.low %v251_v21, %v257_v25  ;;  %v303_v34 = vcombine.low %v263_v26, %v269_v27 }
  0x6c   : > { %v304_v35 = vcombine.low %v275_v29, %v281_v30  ;;  %v305_v36 = vcombine.low %v287_v31, %v293_v32 }
  0x6d   : > { %v312_v37 = vrot.slane %v302_v33, %v854_v20  ;;  %v319_v38 = vrot.slane %v303_v34, %v854_v20 }
  0x6e   : > { %v326_v39 = vrot.slane %v304_v35, %v854_v20  ;;  %v333_v40 = vrot.slane %v305_v36, %v854_v20 }
  0x6f   : > { %v334_v41 = vcombine.low %v312_v37, %v319_v38 }
  0x70   : > { %v335_v42 = vcombine.low %v326_v39, %v333_v40 }
  0x71   : > { %v342_v43 = vrot.slane %v334_v41, %v854_v20 }
  0x72   : > { %v349_v44 = vrot.slane %v335_v42, %v854_v20 }
  0x74   : > { %v350_v45 = vcombine.low %v342_v43, %v349_v44 }
  0x76   : > { %352 = vst [vmem:[%s197_s14] sm:$0xff] %v350_v45 }
  0x77   : > { %608 = shalt.err (!%p605_p1)
}
  0x78   : > { %s609_s27 = scalar_lea.hbm %s881_s17, 128  ;;  %s613_s8 = scalar_lea.hbm %s925_s2, 256 }
  0x79   : > { %p610_p11 = scmp.ne.s32.totalorder %s881_s17, %s609_s27  ;;  %p614_p4 = scmp.lt.u32.totalorder %s881_s17, %s925_s2 }
  0x7a   : > { %p615_p10 = scmp.lt.u32.totalorder %s613_s8, %s609_s27  ;;  %p617_p13 = scmp.lt.u32.totalorder %s609_s27, %s881_s17 }
  0x7b   : > { %p611_p12 = pnand %p610_p11, %p938_p3 }
  0x7c   : > { %p616_p6 = por %p615_p10, %p614_p4 }
  0x7d   : > { %p612_p2 = pneg %p611_p12 }
  0x7e   : > { %p618_p7 = por %p617_p13, %p616_p6 }
  0x80   : > { %p619_p5 = pnand %p618_p7, %p612_p2 }
  0x82   : > { %622 = shalt.err (!%p619_p5)
}
  0x83   : > { %487 = dma.vmem_to_hbm [thread:$0]  (%p938_p3), %s876_s28, 128, %s881_s17, %s354_s19  }
  0x84 PF: > { %s380_s29 = sand.u32 1, %s653_s9   ;;  %p939_p8 = scmp.ne.s32.totalorder %s931_s22, 0 }
  0x85   : > { %p940_p9 = scmp.ge.s32.totalorder %s665_s12, 2  ;;  %s381_s7 = scalar_lea.sflag [#allocation4], %s380_s29 }
  0x87   : > { %p497_p0 = pnand %p940_p9, %p939_p8 }
  0x89   : > { %648 = dma.done.wait (!%p497_p0), %s381_s7, 128  }
  0x8a   : > { %650 = vsyncadd (!%p497_p0), %s381_s7, 4294967168  ;;  %p18_p1 = scmp.ge.s32.totalorder %s711_s15, 4   ;;  %s941_s9 = smov %s657_s10 }
  0x8b   : > { %s942_s10 = smov %s661_s11  ;;  %s943_s11 = smov %s723_s18 }
  0x8c   : > { %s944_s12 = smov %s711_s15  ;;  %20 = sbr.rel (!%p18_p1) target bundleno = 7 (0x7), region = 86 }
  0x93   :  { %386 = vsyncpa [#allocation3], 1 }
  0x94   :  { %388 = vsyncpa [#allocation3 + $0x1], 1 }
  0x95   :  { %389 = vsyncpa [#allocation6], 1 }
  0x96   :  { %391 = vsyncpa [#allocation6 + $0x1], 1 }
  0x97   :  { %392 = vsyncpa [#allocation4], 1 }
  0x98   :  { %394 = vsyncpa [#allocation4 + $0x1], 1 }

</bundles_post_ra>
